<compile_context>
chip_gen: v5e
topology: v5e:2x2
jax: 0.10.0
libtpu: 0.0.40
codegen_flags: <defaults>
</compile_context>

<pallas_src>
import jax
import jax.numpy as jnp
from jax.experimental import pallas as pl
from jax.experimental.pallas import tpu as pltpu

LANES = 1024     # lane width of the flat slab (multiple of 128; 8 vregs wide)
ROW_TILE = 512   # 512 x 1024 x 4B = 2 MiB per f32 block
_ROW_PAD = 32    # pad rows to a multiple of 32 (covers f32/bf16/int8 sublane tiling)


def _copy_kernel(x_ref, o_ref):
    # Identity copy of the current VMEM tile.
    o_ref[...] = x_ref[...]


def _pallas_identity_copy(flat):
    """Identity copy of a flat 1-D buffer through VMEM using large lane-dense tiles."""
    total = flat.shape[0]
    chunk = LANES * _ROW_PAD
    padded_total = pl.cdiv(total, chunk) * chunk
    if padded_total != total:
        flat = jnp.pad(flat, (0, padded_total - total))
    rows = padded_total // LANES
    slab = flat.reshape(rows, LANES)

    tile_rows = min(ROW_TILE, rows)        # rows is a multiple of 32 -> always legal
    grid = (pl.cdiv(rows, tile_rows),)     # partial last block is masked by Pallas
    nbytes = slab.size * slab.dtype.itemsize

    out = pl.pallas_call(
        _copy_kernel,
        out_shape=jax.ShapeDtypeStruct(slab.shape, slab.dtype),
        grid=grid,
        in_specs=[pl.BlockSpec((tile_rows, LANES), lambda i: (i, 0))],
        out_specs=pl.BlockSpec((tile_rows, LANES), lambda i: (i, 0)),
        input_output_aliases={0: 0},       # in-place: no second full-size HBM buffer
        cost_estimate=pl.CostEstimate(flops=0, transcendentals=0,
                                      bytes_accessed=2 * nbytes),
        compiler_params=pltpu.CompilerParams(
            dimension_semantics=("parallel",),
        ),
    )(slab)

    out_flat = out.reshape(-1)
    if padded_total != total:
        out_flat = out_flat[:total]
    return out_flat


def _resolve_shape(shape, total):
    """Resolve a single -1 entry like torch.Tensor.view does."""
    shape = list(shape)
    if -1 in shape:
        known = 1
        for s in shape:
            if s != -1:
                known *= s
        shape[shape.index(-1)] = total // known
    shape = tuple(int(s) for s in shape)
    prod = 1
    for s in shape:
        prod *= s
    assert prod == total, f"cannot view {total} elements as {shape}"
    return shape


def reshape_forward(x, shape, use_pallas_copy=True):
    """Equivalent of torch.Tensor.view(shape)."""
    shape = _resolve_shape(shape, x.size)
    if not use_pallas_copy:
        # Fast path recommended by the perf review: .view is metadata-only, so a
        # plain jnp.reshape (zero-copy under XLA for contiguous data) is exact.
        return x.reshape(shape)
    # Opt-in hot path: stream the flat buffer through a Pallas identity copy.
    out_flat = _pallas_identity_copy(x.reshape(-1))
    # Metadata-only reinterpretation (same semantics as .view on contiguous x).
    return out_flat.reshape(shape)


class Reshape:
    """JAX/Pallas port of the PyTorch Reshape module."""

    def __init__(self, *args, use_pallas_copy=True):
        self.shape = args
        self.use_pallas_copy = use_pallas_copy

    def __call__(self, x):
        return reshape_forward(x, self.shape, self.use_pallas_copy)


if __name__ == "__main__":
    key = jax.random.PRNGKey(0)

    # 1) NCHW-style input reshaped to (N, C, H*W), same as x.view(2, 4, 256).
    x = jax.random.normal(key, (2, 4, 16, 16), dtype=jnp.float32)
    y = jax.block_until_ready(Reshape(2, 4, 256)(x))
    assert y.shape == (2, 4, 256), y.shape
    assert y.dtype == x.dtype
    assert bool(jnp.all(y == x.reshape(2, 4, 256)))

    # 2) -1 inference on an odd-sized tensor (exercises the pad + slice path).
    x2 = jax.random.normal(jax.random.PRNGKey(1), (3, 5, 7), dtype=jnp.float32)
    y2 = jax.block_until_ready(Reshape(5, -1)(x2))
    assert y2.shape == (5, 21)
    assert bool(jnp.all(y2 == x2.reshape(5, 21)))

    # 2b) Packed dtype (bf16): rows padded to a multiple of 32 keeps tiling legal.
    x2b = x2.astype(jnp.bfloat16)
    y2b = jax.block_until_ready(Reshape(21, 5)(x2b))
    assert y2b.shape == (21, 5) and y2b.dtype == jnp.bfloat16
    assert bool(jnp.all(y2b == x2b.reshape(21, 5)))

    # 3) Multi-step grid with a masked partial last block (rows=640, tile=512).
    x3 = jax.random.normal(jax.random.PRNGKey(2), (640, 1024), dtype=jnp.float32)
    y3 = jax.block_until_ready(Reshape(64, 10, 1024)(x3))
    assert y3.shape == (64, 10, 1024)
    assert bool(jnp.all(y3 == x3.reshape(64, 10, 1024)))

    # 4) Metadata-only fast path (zero HBM traffic; recommended in production).
    y4 = jax.block_until_ready(Reshape(2, 4, 256, use_pallas_copy=False)(x))
    assert bool(jnp.all(y4 == x.reshape(2, 4, 256)))

    print("KERNEL_OK")
</pallas_src>

<mosaic_0001>
module attributes {stable_mosaic.version = 11 : i64} {
  func.func @_copy_kernel(%arg0: i32, %arg1: memref<32x1024xf32, #tpu.memory_space<vmem>>, %arg2: memref<32x1024xf32, #tpu.memory_space<vmem>>) attributes {dimension_semantics = [#tpu.dimension_semantics<parallel>], iteration_bounds = array<i64: 1>, scalar_prefetch = 0 : i64, scratch_operands = 0 : i64, tpu.core_type = #tpu.core_type<tc>, window_params = [{transform_indices = @transform_0, window_bounds = array<i64: 32, 1024>}, {transform_indices = @transform_1, window_bounds = array<i64: 32, 1024>}]} {
    %c0 = arith.constant 0 : index
    %c0_0 = arith.constant 0 : index
    %0 = vector.load %arg1[%c0, %c0_0] : memref<32x1024xf32, #tpu.memory_space<vmem>>, vector<32x1024xf32>
    %c0_1 = arith.constant 0 : index
    %c0_2 = arith.constant 0 : index
    %1 = vector.load %arg2[%c0_1, %c0_2] : memref<32x1024xf32, #tpu.memory_space<vmem>>, vector<32x1024xf32>
    tpu.vector_store %arg2[%c0_1, %c0_2], %0 {strides = array<i32>} : memref<32x1024xf32, #tpu.memory_space<vmem>>, vector<32x1024xf32>,
    return
  }
  func.func @transform_0(%arg0: i32) -> (i32, i32) {
    %c0_i32 = arith.constant 0 : i32
    %c0_i32_0 = arith.constant 0 : i32
    return %arg0, %c0_i32 : i32, i32
  }
  func.func @transform_1(%arg0: i32) -> (i32, i32) {
    %c0_i32 = arith.constant 0 : i32
    %c0_i32_0 = arith.constant 0 : i32
    return %arg0, %c0_i32 : i32, i32
  }
}

</mosaic_0001>

<bundles_post_ra>
// kernel: tpu_custom_call.1
= control target key start
LH: loop header
LB: loop body
LE: loop exit
PB: predicated region body
PF: predicated region fallthrough
CT: control target
= control target key end

     0   :  { %6 = vsyncpa [#allocation3], 0  ;;  %s190_s0 = inlined_call_operand.hbm [shape: f32[32,1024], index: 0, kind: input, shape index: {}, may-alias: {0,1}]   ;;  %s191_s1 = inlined_call_operand.hbm [shape: f32[32,1024], index: 1, kind: output, shape index: {}, may-alias: {0,1}]  }
   0x1   :  { %7 = vsyncpa [#allocation4], 0  ;;  %s12_s8 = sshll.u32 %s190_s0, 4  ;;  %s164_s9 = smov [#allocation2]   ;;  %s13_s8 = int_to_ptr.hbm [resolvable:$true] %s12_s8 }
   0x2   :  { %s14_s10 = sshll.u32 %s164_s9, 4  ;;  %s165_s11 = smov 1024   ;;  %s15_s10 = int_to_ptr.vmem [resolvable:$true] %s14_s10 }
   0x3   :  { %s166_s12 = smov 64  }
   0x4   :  { %20 = dma.hbm_to_vmem [thread:$0]  %s13_s8, 4096, %s15_s10, [#allocation3], %s165_s11, %s165_s11, %s166_s12  }
   0x5   :  { %160 = dma.done.wait [#allocation3], 4096  }
   0x6   :  { %161 = vsyncadd [#allocation3], 4294963200  ;;  %v25_v0 = vld [vmem:[#allocation2] sm:$0xff]  ;;  %v26_v1 = vld [vmem:[#allocation2 + $0x8] sm:$0xff]  ;;  %s167_s0 = smov [#allocation5]   ;;  %s95_s16 = sshll.u32 %s191_s1, 4  ;;  %s96_s16 = int_to_ptr.hbm [resolvable:$true] %s95_s16 }
   0x7   :  { %v27_v2 = vld [vmem:[#allocation2 + $0x10] sm:$0xff]  ;;  %57 = vst [vmem:[#allocation5] sm:$0xff] %v25_v0  ;;  %v28_v3 = vld [vmem:[#allocation2 + $0x18] sm:$0xff]  ;;  %v29_v4 = vld [vmem:[#allocation2 + $0x20] sm:$0xff]  ;;  %s93_s13 = sshll.u32 %s167_s0, 4  ;;  %s94_s13 = int_to_ptr.vmem [resolvable:$true] %s93_s13 }
   0x8   :  { %58 = vst [vmem:[#allocation5 + $0x8] sm:$0xff] %v26_v1  ;;  %v30_v5 = vld [vmem:[#allocation2 + $0x28] sm:$0xff]  ;;  %v31_v6 = vld [vmem:[#allocation2 + $0x30] sm:$0xff]  ;;  %v32_v7 = vld [vmem:[#allocation2 + $0x38] sm:$0xff] }
   0x9   :  { %59 = vst [vmem:[#allocation5 + $0x10] sm:$0xff] %v27_v2  ;;  %v33_v8 = vld [vmem:[#allocation2 + $0x40] sm:$0xff]  ;;  %v34_v9 = vld [vmem:[#allocation2 + $0x48] sm:$0xff]  ;;  %v35_v10 = vld [vmem:[#allocation2 + $0x50] sm:$0xff] }
   0xa   :  { %60 = vst [vmem:[#allocation5 + $0x18] sm:$0xff] %v28_v3  ;;  %v36_v11 = vld [vmem:[#allocation2 + $0x58] sm:$0xff]  ;;  %v37_v12 = vld [vmem:[#allocation2 + $0x60] sm:$0xff]  ;;  %v38_v13 = vld [vmem:[#allocation2 + $0x68] sm:$0xff] }
   0xb   :  { %61 = vst [vmem:[#allocation5 + $0x20] sm:$0xff] %v29_v4  ;;  %v39_v14 = vld [vmem:[#allocation2 + $0x70] sm:$0xff]  ;;  %v40_v15 = vld [vmem:[#allocation2 + $0x78] sm:$0xff]  ;;  %v41_v16 = vld [vmem:[#allocation2 + $0x80] sm:$0xff] }
   0xc   :  { %62 = vst [vmem:[#allocation5 + $0x28] sm:$0xff] %v30_v5  ;;  %v42_v17 = vld [vmem:[#allocation2 + $0x88] sm:$0xff]  ;;  %v43_v18 = vld [vmem:[#allocation2 + $0x90] sm:$0xff]  ;;  %v44_v19 = vld [vmem:[#allocation2 + $0x98] sm:$0xff] }
   0xd   :  { %63 = vst [vmem:[#allocation5 + $0x30] sm:$0xff] %v31_v6  ;;  %v45_v20 = vld [vmem:[#allocation2 + $0xa0] sm:$0xff]  ;;  %v46_v21 = vld [vmem:[#allocation2 + $0xa8] sm:$0xff]  ;;  %v47_v22 = vld [vmem:[#allocation2 + $0xb0] sm:$0xff] }
   0xe   :  { %64 = vst [vmem:[#allocation5 + $0x38] sm:$0xff] %v32_v7  ;;  %v48_v23 = vld [vmem:[#allocation2 + $0xb8] sm:$0xff]  ;;  %v49_v24 = vld [vmem:[#allocation2 + $0xc0] sm:$0xff]  ;;  %v50_v25 = vld [vmem:[#allocation2 + $0xc8] sm:$0xff] }
   0xf   :  { %65 = vst [vmem:[#allocation5 + $0x40] sm:$0xff] %v33_v8  ;;  %v51_v26 = vld [vmem:[#allocation2 + $0xd0] sm:$0xff]  ;;  %v52_v27 = vld [vmem:[#allocation2 + $0xd8] sm:$0xff]  ;;  %v53_v28 = vld [vmem:[#allocation2 + $0xe0] sm:$0xff] }
  0x10   :  { %66 = vst [vmem:[#allocation5 + $0x48] sm:$0xff] %v34_v9  ;;  %v54_v29 = vld [vmem:[#allocation2 + $0xe8] sm:$0xff]  ;;  %v55_v30 = vld [vmem:[#allocation2 + $0xf0] sm:$0xff]  ;;  %v56_v31 = vld [vmem:[#allocation2 + $0xf8] sm:$0xff] }
  0x11   :  { %67 = vst [vmem:[#allocation5 + $0x50] sm:$0xff] %v35_v10 }
  0x12   :  { %68 = vst [vmem:[#allocation5 + $0x58] sm:$0xff] %v36_v11 }
  0x13   :  { %69 = vst [vmem:[#allocation5 + $0x60] sm:$0xff] %v37_v12 }
  0x14   :  { %70 = vst [vmem:[#allocation5 + $0x68] sm:$0xff] %v38_v13 }
  0x15   :  { %71 = vst [vmem:[#allocation5 + $0x70] sm:$0xff] %v39_v14 }
  0x16   :  { %72 = vst [vmem:[#allocation5 + $0x78] sm:$0xff] %v40_v15 }
  0x17   :  { %73 = vst [vmem:[#allocation5 + $0x80] sm:$0xff] %v41_v16 }
  0x18   :  { %74 = vst [vmem:[#allocation5 + $0x88] sm:$0xff] %v42_v17 }
  0x19   :  { %75 = vst [vmem:[#allocation5 + $0x90] sm:$0xff] %v43_v18 }
  0x1a   :  { %76 = vst [vmem:[#allocation5 + $0x98] sm:$0xff] %v44_v19 }
  0x1b   :  { %77 = vst [vmem:[#allocation5 + $0xa0] sm:$0xff] %v45_v20 }
  0x1c   :  { %78 = vst [vmem:[#allocation5 + $0xa8] sm:$0xff] %v46_v21 }
  0x1d   :  { %79 = vst [vmem:[#allocation5 + $0xb0] sm:$0xff] %v47_v22 }
  0x1e   :  { %80 = vst [vmem:[#allocation5 + $0xb8] sm:$0xff] %v48_v23 }
  0x1f   :  { %81 = vst [vmem:[#allocation5 + $0xc0] sm:$0xff] %v49_v24 }
  0x20   :  { %82 = vst [vmem:[#allocation5 + $0xc8] sm:$0xff] %v50_v25 }
  0x21   :  { %83 = vst [vmem:[#allocation5 + $0xd0] sm:$0xff] %v51_v26 }
  0x22   :  { %84 = vst [vmem:[#allocation5 + $0xd8] sm:$0xff] %v52_v27 }
  0x23   :  { %85 = vst [vmem:[#allocation5 + $0xe0] sm:$0xff] %v53_v28 }
  0x24   :  { %86 = vst [vmem:[#allocation5 + $0xe8] sm:$0xff] %v54_v29 }
  0x25   :  { %87 = vst [vmem:[#allocation5 + $0xf0] sm:$0xff] %v55_v30 }
  0x26   :  { %88 = vst [vmem:[#allocation5 + $0xf8] sm:$0xff] %v56_v31 }
  0x27   :  { %101 = dma.vmem_to_hbm [thread:$0]  %s94_s13, 4096, %s96_s16, [#allocation4], %s165_s11, %s165_s11, %s166_s12  }
  0x28   :  { %162 = dma.done.wait [#allocation4], 4096  }
  0x29   :  { %163 = vsyncadd [#allocation4], 4294963200 }
  0x2a   :  { %106 = vsyncpa [#allocation3], 1 }
  0x2b   :  { %107 = vsyncpa [#allocation4], 1 }

</bundles_post_ra>
